<compile_context>
chip_gen: v7x
topology: tpu7x:2x2x1
jax: 0.10.0
libtpu: 0.0.40
codegen_flags: <defaults>
</compile_context>

<pallas_src>
import functools

import jax
import jax.numpy as jnp
from jax.experimental import pallas as pl
from jax.experimental.pallas import tpu as pltpu

_LANE = 128     # lane width: last dim of every tile padded to this
_SUBLANE = 8    # sublane width: second-to-last dim padded to this
_LN_EPS = 1e-5  # torch.nn.LayerNorm default eps


def _round_up(v, m):
    return ((v + m - 1) // m) * m


def _pad2(x, rows, cols):
    r, c = x.shape
    return jnp.pad(x, ((0, rows - r), (0, cols - c)))


# ----------------------------- fused Pallas kernel -----------------------------

def _fused_molgnn_kernel(a_ref, x_ref, init_w_ref, init_b_ref,
                         gcn_w_ref, gcn_b_ref, ln_g_ref, ln_b_ref,
                         pool_ref, cls_w_ref, cls_b_ref, o_ref,
                         *, num_layers: int, hidden_dim: int):
    """Entire MolGNN forward with all state resident in VMEM.

    Feature dims are zero-padded to 128 lanes.  Padded weight / bias / gamma /
    beta columns are zero, so the padded columns of h are exactly zero after
    every layer; the LayerNorm reductions therefore divide by the *true*
    hidden_dim and remain exact.
    """
    inv_h = 1.0 / float(hidden_dim)

    # x = self.init(x)
    h = jnp.dot(x_ref[...], init_w_ref[...],
                preferred_element_type=jnp.float32) + init_b_ref[...]

    a_hat = a_ref[...]   # loaded once, reused by every message-passing layer

    # message-passing layers (num_layers is small & static -> unrolled)
    for i in range(num_layers):
        # GCNConv: h = A_hat @ (h @ W_i) + b_i
        xw = jnp.dot(h, gcn_w_ref[i], preferred_element_type=jnp.float32)
        h = jnp.dot(a_hat, xw, preferred_element_type=jnp.float32) + gcn_b_ref[i]
        if i != num_layers - 1:
            # ReLU -> LayerNorm(hidden)   (dropout p=0 -> identity)
            h = jnp.maximum(h, 0.0)
            # one reduction pass: var = E[h^2] - mu^2 over the TRUE hidden width
            mu = jnp.sum(h, axis=-1, keepdims=True) * inv_h
            ex2 = jnp.sum(h * h, axis=-1, keepdims=True) * inv_h
            var = jnp.maximum(ex2 - mu * mu, 0.0)
            h = (h - mu) * jax.lax.rsqrt(var + _LN_EPS)
            h = h * ln_g_ref[i] + ln_b_ref[i]   # zero-padded -> pad cols stay 0

    # global_mean_pool (dense pooling matmul) + (dropout p=0) + cls
    pooled = jnp.dot(pool_ref[...], h, preferred_element_type=jnp.float32)
    o_ref[...] = (jnp.dot(pooled, cls_w_ref[...],
                          preferred_element_type=jnp.float32) + cls_b_ref[...])


# ------------------------------ JAX glue ----------------------------------

def build_gcn_adj(edge_index, num_nodes):
    """Dense \\hat{A} = D^{-1/2}(A + I)D^{-1/2}, matching PyG GCNConv gcn_norm."""
    src, dst = edge_index[0], edge_index[1]
    loop = jnp.arange(num_nodes, dtype=src.dtype)
    src = jnp.concatenate([src, loop])
    dst = jnp.concatenate([dst, loop])
    ones = jnp.ones(src.shape[0], jnp.float32)
    deg = jnp.zeros((num_nodes,), jnp.float32).at[dst].add(ones)
    dinv = jnp.where(deg > 0, 1.0 / jnp.sqrt(deg), 0.0)
    norm = dinv[src] * dinv[dst]
    # A_hat[i, j] aggregates message j -> i
    return jnp.zeros((num_nodes, num_nodes), jnp.float32).at[dst, src].add(norm)


def build_pool_matrix(batch, num_graphs):
    """P[g, n] = 1/|V_g| if node n belongs to graph g (global mean pool)."""
    onehot = (batch[None, :] == jnp.arange(num_graphs)[:, None]).astype(jnp.float32)
    counts = jnp.sum(onehot, axis=1, keepdims=True)
    return onehot / jnp.maximum(counts, 1.0)


def prepare_params(init_w, init_b, gcn_w, gcn_b, ln_gamma, ln_beta,
                   cls_w, cls_b):
    """Pad all params lane-dense (once, on the host) and stack the per-layer ones."""
    dim_in, hidden = init_w.shape
    dim_out = cls_w.shape[1]
    num_layers = len(gcn_w)
    din_p = _round_up(dim_in, _LANE)
    h_p = _round_up(hidden, _LANE)
    dout_p = _round_up(dim_out, _LANE)

    if ln_gamma:  # num_layers - 1 LayerNorms (last layer has none)
        ln_g = jnp.stack([_pad2(g.reshape(1, -1), 1, h_p) for g in ln_gamma])
        ln_b = jnp.stack([_pad2(b.reshape(1, -1), 1, h_p) for b in ln_beta])
    else:         # num_layers == 1: LN never applied; keep a 1-entry dummy
        ln_g = jnp.zeros((1, 1, h_p), jnp.float32)
        ln_b = jnp.zeros((1, 1, h_p), jnp.float32)

    padded = dict(
        init_w=_pad2(init_w, din_p, h_p),
        init_b=_pad2(init_b.reshape(1, -1), 1, h_p),
        gcn_w=jnp.stack([_pad2(w, h_p, h_p) for w in gcn_w]),
        gcn_b=jnp.stack([_pad2(b.reshape(1, -1), 1, h_p) for b in gcn_b]),
        ln_gamma=ln_g,
        ln_beta=ln_b,
        cls_w=_pad2(cls_w, h_p, dout_p),
        cls_b=_pad2(cls_b.reshape(1, -1), 1, dout_p),
    )
    meta = dict(num_layers=num_layers, hidden=hidden,
                dim_in=dim_in, dim_out=dim_out)
    return padded, meta


def mol_gnn_forward(padded_params, x, edge_index, batch, y, *,
                    num_layers, hidden, dim_out, num_graphs):
    num_nodes = x.shape[0]
    n_pad = _round_up(num_nodes, _SUBLANE)
    g_pad = _round_up(num_graphs, _SUBLANE)
    din_pad = padded_params["init_w"].shape[0]
    dout_pad = padded_params["cls_w"].shape[1]

    a_hat = _pad2(build_gcn_adj(edge_index, num_nodes), n_pad, n_pad)
    pool_mat = _pad2(build_pool_matrix(batch, num_graphs), g_pad, n_pad)
    x_p = _pad2(x.astype(jnp.float32), n_pad, din_pad)

    kernel = functools.partial(_fused_molgnn_kernel,
                               num_layers=num_layers, hidden_dim=hidden)
    vmem = lambda: pl.BlockSpec(memory_space=pltpu.MemorySpace.VMEM)
    logits_p = pl.pallas_call(
        kernel,
        out_shape=jax.ShapeDtypeStruct((g_pad, dout_pad), jnp.float32),
        in_specs=[vmem() for _ in range(11)],
        out_specs=vmem(),
    )(a_hat, x_p,
      padded_params["init_w"], padded_params["init_b"],
      padded_params["gcn_w"], padded_params["gcn_b"],
      padded_params["ln_gamma"], padded_params["ln_beta"],
      pool_mat,
      padded_params["cls_w"], padded_params["cls_b"])

    # slice the zero-padded graph rows / output columns back off
    return logits_p[:num_graphs, :dim_out], y


# ------------------------------- main --------------------------------------

if __name__ == "__main__":
    # cfg-equivalent hyperparameters
    dim_in, dim_out = 8, 4
    hidden_dim = 32
    num_layers = 3
    nodes_per_graph = 8
    num_graphs = 2
    num_nodes = nodes_per_graph * num_graphs

    key = jax.random.PRNGKey(0)
    keys = jax.random.split(key, 12)

    # --- deterministic synthetic graph batch (two ring graphs + chords) ---
    def graph_edges(offset):
        ring_src = jnp.arange(nodes_per_graph) + offset
        ring_dst = (jnp.arange(nodes_per_graph) + 1) % nodes_per_graph + offset
        chord_src = jnp.array([0, 2]) + offset
        chord_dst = jnp.array([4, 6]) + offset
        src = jnp.concatenate([ring_src, chord_src])
        dst = jnp.concatenate([ring_dst, chord_dst])
        # undirected: both directions
        return (jnp.concatenate([src, dst]), jnp.concatenate([dst, src]))

    s0, d0 = graph_edges(0)
    s1, d1 = graph_edges(nodes_per_graph)
    edge_index = jnp.stack([jnp.concatenate([s0, s1]),
                            jnp.concatenate([d0, d1])]).astype(jnp.int32)

    batch = jnp.concatenate([
        jnp.zeros(nodes_per_graph, jnp.int32),
        jnp.ones(nodes_per_graph, jnp.int32),
    ])
    x = jax.random.normal(keys[0], (num_nodes, dim_in), jnp.float32)
    y = jnp.array([0, 1], jnp.int32)

    # --- deterministic parameter init (shapes from __init__) ---
    def init_linear(k, fan_in, fan_out):
        w = jax.random.normal(k, (fan_in, fan_out), jnp.float32) / jnp.sqrt(fan_in)
        b = jnp.zeros((1, fan_out), jnp.float32)
        return w, b

    init_w, init_b = init_linear(keys[1], dim_in, hidden_dim)
    cls_w, cls_b = init_linear(keys[2], hidden_dim, dim_out)
    gcn_w, gcn_b, ln_gamma, ln_beta = [], [], [], []
    for i in range(num_layers):
        w, b = init_linear(keys[3 + i], hidden_dim, hidden_dim)
        gcn_w.append(w)
        gcn_b.append(b)
        if i != num_layers - 1:        # last layer has no LayerNorm
            ln_gamma.append(jnp.ones((1, hidden_dim), jnp.float32))
            ln_beta.append(jnp.zeros((1, hidden_dim), jnp.float32))

    padded_params, meta = prepare_params(
        init_w, init_b, gcn_w, gcn_b, ln_gamma, ln_beta, cls_w, cls_b)

    fwd = jax.jit(mol_gnn_forward,
                  static_argnames=("num_layers", "hidden", "dim_out",
                                   "num_graphs"))
    logits, y_out = fwd(padded_params, x, edge_index, batch, y,
                        num_layers=meta["num_layers"], hidden=meta["hidden"],
                        dim_out=meta["dim_out"], num_graphs=num_graphs)
    jax.block_until_ready(logits)
    jax.block_until_ready(y_out)
    assert logits.shape == (num_graphs, dim_out)
    assert bool(jnp.all(jnp.isfinite(logits)))
    print("KERNEL_OK")
</pallas_src>

<mosaic_0001>
module attributes {stable_mosaic.version = 11 : i64} {
  func.func @_fused_molgnn_kernel(%arg0: memref<16x16xf32, #tpu.memory_space<vmem>>, %arg1: memref<16x128xf32, #tpu.memory_space<vmem>>, %arg2: memref<128x128xf32, #tpu.memory_space<vmem>>, %arg3: memref<1x128xf32, #tpu.memory_space<vmem>>, %arg4: memref<3x128x128xf32, #tpu.memory_space<vmem>>, %arg5: memref<3x1x128xf32, #tpu.memory_space<vmem>>, %arg6: memref<2x1x128xf32, #tpu.memory_space<vmem>>, %arg7: memref<2x1x128xf32, #tpu.memory_space<vmem>>, %arg8: memref<8x16xf32, #tpu.memory_space<vmem>>, %arg9: memref<128x128xf32, #tpu.memory_space<vmem>>, %arg10: memref<1x128xf32, #tpu.memory_space<vmem>>, %arg11: memref<8x128xf32, #tpu.memory_space<vmem>>) attributes {dimension_semantics = [], scalar_prefetch = 0 : i64, scratch_operands = 0 : i64, tpu.core_type = #tpu.core_type<tc>} {
    %c0 = arith.constant 0 : index
    %c0_0 = arith.constant 0 : index
    %0 = vector.load %arg1[%c0, %c0_0] : memref<16x128xf32, #tpu.memory_space<vmem>>, vector<16x128xf32>
    %c0_1 = arith.constant 0 : index
    %c0_2 = arith.constant 0 : index
    %1 = vector.load %arg2[%c0_1, %c0_2] : memref<128x128xf32, #tpu.memory_space<vmem>>, vector<128x128xf32>
    %cst = arith.constant dense<0.000000e+00> : vector<16x128xf32>
    %2 = tpu.matmul %0, %1, %cst {dimension_numbers = #tpu.dot_dimension_numbers<[1], [0], [0], [1], [0, 0, 1, 1], [], []>} : vector<16x128xf32>, vector<128x128xf32>, vector<16x128xf32> -> vector<16x128xf32>
    %c0_3 = arith.constant 0 : index
    %c0_4 = arith.constant 0 : index
    %3 = vector.load %arg3[%c0_3, %c0_4] : memref<1x128xf32, #tpu.memory_space<vmem>>, vector<1x128xf32>
    %4 = vector.broadcast %3 : vector<1x128xf32> to vector<16x128xf32>
    %5 = arith.addf %2, %4 : vector<16x128xf32>
    %c0_5 = arith.constant 0 : index
    %c0_6 = arith.constant 0 : index
    %6 = vector.load %arg0[%c0_5, %c0_6] : memref<16x16xf32, #tpu.memory_space<vmem>>, vector<16x16xf32>
    %c0_7 = arith.constant 0 : index
    %c0_8 = arith.constant 0 : index
    %c0_9 = arith.constant 0 : index
    %7 = vector.load %arg4[%c0_7, %c0_8, %c0_9] : memref<3x128x128xf32, #tpu.memory_space<vmem>>, vector<1x128x128xf32>
    %8 = vector.shape_cast %7 : vector<1x128x128xf32> to vector<128x128xf32>
    %cst_10 = arith.constant dense<0.000000e+00> : vector<16x128xf32>
    %9 = tpu.matmul %5, %8, %cst_10 {dimension_numbers = #tpu.dot_dimension_numbers<[1], [0], [0], [1], [0, 0, 1, 1], [], []>} : vector<16x128xf32>, vector<128x128xf32>, vector<16x128xf32> -> vector<16x128xf32>
    %cst_11 = arith.constant dense<0.000000e+00> : vector<16x128xf32>
    %10 = tpu.matmul %6, %9, %cst_11 {dimension_numbers = #tpu.dot_dimension_numbers<[1], [0], [0], [1], [0, 0, 1, 1], [], []>} : vector<16x16xf32>, vector<16x128xf32>, vector<16x128xf32> -> vector<16x128xf32>
    %c0_12 = arith.constant 0 : index
    %c0_13 = arith.constant 0 : index
    %c0_14 = arith.constant 0 : index
    %11 = vector.load %arg5[%c0_12, %c0_13, %c0_14] : memref<3x1x128xf32, #tpu.memory_space<vmem>>, vector<1x1x128xf32>
    %12 = vector.shape_cast %11 : vector<1x1x128xf32> to vector<1x128xf32>
    %13 = vector.broadcast %12 : vector<1x128xf32> to vector<16x128xf32>
    %14 = arith.addf %10, %13 : vector<16x128xf32>
    %cst_15 = arith.constant 0.000000e+00 : f32
    %15 = vector.broadcast %cst_15 : f32 to vector<16x128xf32>
    %16 = arith.maximumf %14, %15 : vector<16x128xf32>
    %cst_16 = arith.constant dense<0.000000e+00> : vector<16xf32>
    %17 = vector.multi_reduction <add>, %16, %cst_16 [1] : vector<16x128xf32> to vector<16xf32>
    %18 = vector.shape_cast %17 : vector<16xf32> to vector<16x1xf32>
    %cst_17 = arith.constant 3.125000e-02 : f32
    %19 = vector.broadcast %cst_17 : f32 to vector<16x1xf32>
    %20 = arith.mulf %18, %19 : vector<16x1xf32>
    %21 = arith.mulf %16, %16 : vector<16x128xf32>
    %cst_18 = arith.constant dense<0.000000e+00> : vector<16xf32>
    %22 = vector.multi_reduction <add>, %21, %cst_18 [1] : vector<16x128xf32> to vector<16xf32>
    %23 = vector.shape_cast %22 : vector<16xf32> to vector<16x1xf32>
    %cst_19 = arith.constant 3.125000e-02 : f32
    %24 = vector.broadcast %cst_19 : f32 to vector<16x1xf32>
    %25 = arith.mulf %23, %24 : vector<16x1xf32>
    %26 = arith.mulf %20, %20 : vector<16x1xf32>
    %27 = arith.subf %25, %26 : vector<16x1xf32>
    %cst_20 = arith.constant 0.000000e+00 : f32
    %28 = vector.broadcast %cst_20 : f32 to vector<16x1xf32>
    %29 = arith.maximumf %27, %28 : vector<16x1xf32>
    %30 = vector.broadcast %20 : vector<16x1xf32> to vector<16x128xf32>
    %31 = arith.subf %16, %30 : vector<16x128xf32>
    %cst_21 = arith.constant 9.99999974E-6 : f32
    %32 = vector.broadcast %cst_21 : f32 to vector<16x1xf32>
    %33 = arith.addf %29, %32 : vector<16x1xf32>
    %34 = math.rsqrt %33 : vector<16x1xf32>
    %35 = vector.broadcast %34 : vector<16x1xf32> to vector<16x128xf32>
    %36 = arith.mulf %31, %35 : vector<16x128xf32>
    %c0_22 = arith.constant 0 : index
    %c0_23 = arith.constant 0 : index
    %c0_24 = arith.constant 0 : index
    %37 = vector.load %arg6[%c0_22, %c0_23, %c0_24] : memref<2x1x128xf32, #tpu.memory_space<vmem>>, vector<1x1x128xf32>
    %38 = vector.shape_cast %37 : vector<1x1x128xf32> to vector<1x128xf32>
    %39 = vector.broadcast %38 : vector<1x128xf32> to vector<16x128xf32>
    %40 = arith.mulf %36, %39 : vector<16x128xf32>
    %c0_25 = arith.constant 0 : index
    %c0_26 = arith.constant 0 : index
    %c0_27 = arith.constant 0 : index
    %41 = vector.load %arg7[%c0_25, %c0_26, %c0_27] : memref<2x1x128xf32, #tpu.memory_space<vmem>>, vector<1x1x128xf32>
    %42 = vector.shape_cast %41 : vector<1x1x128xf32> to vector<1x128xf32>
    %43 = vector.broadcast %42 : vector<1x128xf32> to vector<16x128xf32>
    %44 = arith.addf %40, %43 : vector<16x128xf32>
    %c1 = arith.constant 1 : index
    %c0_28 = arith.constant 0 : index
    %c0_29 = arith.constant 0 : index
    %45 = vector.load %arg4[%c1, %c0_28, %c0_29] : memref<3x128x128xf32, #tpu.memory_space<vmem>>, vector<1x128x128xf32>
    %46 = vector.shape_cast %45 : vector<1x128x128xf32> to vector<128x128xf32>
    %cst_30 = arith.constant dense<0.000000e+00> : vector<16x128xf32>
    %47 = tpu.matmul %44, %46, %cst_30 {dimension_numbers = #tpu.dot_dimension_numbers<[1], [0], [0], [1], [0, 0, 1, 1], [], []>} : vector<16x128xf32>, vector<128x128xf32>, vector<16x128xf32> -> vector<16x128xf32>
    %cst_31 = arith.constant dense<0.000000e+00> : vector<16x128xf32>
    %48 = tpu.matmul %6, %47, %cst_31 {dimension_numbers = #tpu.dot_dimension_numbers<[1], [0], [0], [1], [0, 0, 1, 1], [], []>} : vector<16x16xf32>, vector<16x128xf32>, vector<16x128xf32> -> vector<16x128xf32>
    %c1_32 = arith.constant 1 : index
    %c0_33 = arith.constant 0 : index
    %c0_34 = arith.constant 0 : index
    %49 = vector.load %arg5[%c1_32, %c0_33, %c0_34] : memref<3x1x128xf32, #tpu.memory_space<vmem>>, vector<1x1x128xf32>
    %50 = vector.shape_cast %49 : vector<1x1x128xf32> to vector<1x128xf32>
    %51 = vector.broadcast %50 : vector<1x128xf32> to vector<16x128xf32>
    %52 = arith.addf %48, %51 : vector<16x128xf32>
    %cst_35 = arith.constant 0.000000e+00 : f32
    %53 = vector.broadcast %cst_35 : f32 to vector<16x128xf32>
    %54 = arith.maximumf %52, %53 : vector<16x128xf32>
    %cst_36 = arith.constant dense<0.000000e+00> : vector<16xf32>
    %55 = vector.multi_reduction <add>, %54, %cst_36 [1] : vector<16x128xf32> to vector<16xf32>
    %56 = vector.shape_cast %55 : vector<16xf32> to vector<16x1xf32>
    %cst_37 = arith.constant 3.125000e-02 : f32
    %57 = vector.broadcast %cst_37 : f32 to vector<16x1xf32>
    %58 = arith.mulf %56, %57 : vector<16x1xf32>
    %59 = arith.mulf %54, %54 : vector<16x128xf32>
    %cst_38 = arith.constant dense<0.000000e+00> : vector<16xf32>
    %60 = vector.multi_reduction <add>, %59, %cst_38 [1] : vector<16x128xf32> to vector<16xf32>
    %61 = vector.shape_cast %60 : vector<16xf32> to vector<16x1xf32>
    %cst_39 = arith.constant 3.125000e-02 : f32
    %62 = vector.broadcast %cst_39 : f32 to vector<16x1xf32>
    %63 = arith.mulf %61, %62 : vector<16x1xf32>
    %64 = arith.mulf %58, %58 : vector<16x1xf32>
    %65 = arith.subf %63, %64 : vector<16x1xf32>
    %cst_40 = arith.constant 0.000000e+00 : f32
    %66 = vector.broadcast %cst_40 : f32 to vector<16x1xf32>
    %67 = arith.maximumf %65, %66 : vector<16x1xf32>
    %68 = vector.broadcast %58 : vector<16x1xf32> to vector<16x128xf32>
    %69 = arith.subf %54, %68 : vector<16x128xf32>
    %cst_41 = arith.constant 9.99999974E-6 : f32
    %70 = vector.broadcast %cst_41 : f32 to vector<16x1xf32>
    %71 = arith.addf %67, %70 : vector<16x1xf32>
    %72 = math.rsqrt %71 : vector<16x1xf32>
    %73 = vector.broadcast %72 : vector<16x1xf32> to vector<16x128xf32>
    %74 = arith.mulf %69, %73 : vector<16x128xf32>
    %c1_42 = arith.constant 1 : index
    %c0_43 = arith.constant 0 : index
    %c0_44 = arith.constant 0 : index
    %75 = vector.load %arg6[%c1_42, %c0_43, %c0_44] : memref<2x1x128xf32, #tpu.memory_space<vmem>>, vector<1x1x128xf32>
    %76 = vector.shape_cast %75 : vector<1x1x128xf32> to vector<1x128xf32>
    %77 = vector.broadcast %76 : vector<1x128xf32> to vector<16x128xf32>
    %78 = arith.mulf %74, %77 : vector<16x128xf32>
    %c1_45 = arith.constant 1 : index
    %c0_46 = arith.constant 0 : index
    %c0_47 = arith.constant 0 : index
    %79 = vector.load %arg7[%c1_45, %c0_46, %c0_47] : memref<2x1x128xf32, #tpu.memory_space<vmem>>, vector<1x1x128xf32>
    %80 = vector.shape_cast %79 : vector<1x1x128xf32> to vector<1x128xf32>
    %81 = vector.broadcast %80 : vector<1x128xf32> to vector<16x128xf32>
    %82 = arith.addf %78, %81 : vector<16x128xf32>
    %c2 = arith.constant 2 : index
    %c0_48 = arith.constant 0 : index
    %c0_49 = arith.constant 0 : index
    %83 = vector.load %arg4[%c2, %c0_48, %c0_49] : memref<3x128x128xf32, #tpu.memory_space<vmem>>, vector<1x128x128xf32>
    %84 = vector.shape_cast %83 : vector<1x128x128xf32> to vector<128x128xf32>
    %cst_50 = arith.constant dense<0.000000e+00> : vector<16x128xf32>
    %85 = tpu.matmul %82, %84, %cst_50 {dimension_numbers = #tpu.dot_dimension_numbers<[1], [0], [0], [1], [0, 0, 1, 1], [], []>} : vector<16x128xf32>, vector<128x128xf32>, vector<16x128xf32> -> vector<16x128xf32>
    %cst_51 = arith.constant dense<0.000000e+00> : vector<16x128xf32>
    %86 = tpu.matmul %6, %85, %cst_51 {dimension_numbers = #tpu.dot_dimension_numbers<[1], [0], [0], [1], [0, 0, 1, 1], [], []>} : vector<16x16xf32>, vector<16x128xf32>, vector<16x128xf32> -> vector<16x128xf32>
    %c2_52 = arith.constant 2 : index
    %c0_53 = arith.constant 0 : index
    %c0_54 = arith.constant 0 : index
    %87 = vector.load %arg5[%c2_52, %c0_53, %c0_54] : memref<3x1x128xf32, #tpu.memory_space<vmem>>, vector<1x1x128xf32>
    %88 = vector.shape_cast %87 : vector<1x1x128xf32> to vector<1x128xf32>
    %89 = vector.broadcast %88 : vector<1x128xf32> to vector<16x128xf32>
    %90 = arith.addf %86, %89 : vector<16x128xf32>
    %c0_55 = arith.constant 0 : index
    %c0_56 = arith.constant 0 : index
    %91 = vector.load %arg8[%c0_55, %c0_56] : memref<8x16xf32, #tpu.memory_space<vmem>>, vector<8x16xf32>
    %cst_57 = arith.constant dense<0.000000e+00> : vector<8x128xf32>
    %92 = tpu.matmul %91, %90, %cst_57 {dimension_numbers = #tpu.dot_dimension_numbers<[1], [0], [0], [1], [0, 0, 1, 1], [], []>} : vector<8x16xf32>, vector<16x128xf32>, vector<8x128xf32> -> vector<8x128xf32>
    %c0_58 = arith.constant 0 : index
    %c0_59 = arith.constant 0 : index
    %93 = vector.load %arg9[%c0_58, %c0_59] : memref<128x128xf32, #tpu.memory_space<vmem>>, vector<128x128xf32>
    %cst_60 = arith.constant dense<0.000000e+00> : vector<8x128xf32>
    %94 = tpu.matmul %92, %93, %cst_60 {dimension_numbers = #tpu.dot_dimension_numbers<[1], [0], [0], [1], [0, 0, 1, 1], [], []>} : vector<8x128xf32>, vector<128x128xf32>, vector<8x128xf32> -> vector<8x128xf32>
    %c0_61 = arith.constant 0 : index
    %c0_62 = arith.constant 0 : index
    %95 = vector.load %arg10[%c0_61, %c0_62] : memref<1x128xf32, #tpu.memory_space<vmem>>, vector<1x128xf32>
    %96 = vector.broadcast %95 : vector<1x128xf32> to vector<8x128xf32>
    %97 = arith.addf %94, %96 : vector<8x128xf32>
    %c0_63 = arith.constant 0 : index
    %c0_64 = arith.constant 0 : index
    %98 = vector.load %arg11[%c0_63, %c0_64] : memref<8x128xf32, #tpu.memory_space<vmem>>, vector<8x128xf32>
    tpu.vector_store %arg11[%c0_63, %c0_64], %97 {strides = array<i32>} : memref<8x128xf32, #tpu.memory_space<vmem>>, vector<8x128xf32>,
    return
  }
}

</mosaic_0001>

<bundles_post_ra>
// kernel: mul.1
= control target key start
LH: loop header
LB: loop body
LE: loop exit
PB: predicated region body
PF: predicated region fallthrough
CT: control target
= control target key end

     0   :  { %s34_s0 = inlined_call_operand.vmem [shape: f32[56], index: 0, kind: input, shape index: {}]   ;;  %s35_s1 = inlined_call_operand.vmem [shape: f32[56], index: 1, kind: input, shape index: {}]   ;;  %s36_s2 = inlined_call_operand.vmem [shape: f32[56], index: 2, kind: output, shape index: {}]  }
   0x1   :  { %v3_v0 = vld [vmem:[%s34_s0] sm:$0x1] }
   0x2   :  { %v4_v1 = vld [vmem:[%s35_s1] sm:$0x1] }
   0x3   :  { %v7_v2 = vmul.f32 %v4_v1, %v3_v0 }
   0x5   :  { %9 = vst [vmem:[%s36_s2] sm:$0x1] %v7_v2 }

// kernel: mol_gnn_forward.1
= control target key start
LH: loop header
LB: loop body
LE: loop exit
PB: predicated region body
PF: predicated region fallthrough
CT: control target
= control target key end

     0   :  { %vm238_vm0 = vcmask 130048   ;;  %vm1478_vm1 = vmmov 0   ;;  %s1866_s2 = inlined_call_operand.vmem [shape: f32[128,128], index: 2, kind: input, shape index: {}]   ;;  %s1867_s1 = inlined_call_operand.vmem [shape: f32[16,128], index: 1, kind: input, shape index: {}]   ;;  %s1868_s4 = inlined_call_operand.vmem [shape: f32[3,128,128], index: 4, kind: input, shape index: {}]   ;;  %s1869_s3 = inlined_call_operand.vmem [shape: f32[1,128], index: 3, kind: input, shape index: {}]   ;;  %s1870_s0 = inlined_call_operand.vmem [shape: f32[16,16], index: 0, kind: input, shape index: {}]   ;;  %s1871_s5 = inlined_call_operand.vmem [shape: f32[3,1,128], index: 5, kind: input, shape index: {}]   ;;  %s1872_s6 = inlined_call_operand.vmem [shape: f32[2,1,128], index: 6, kind: input, shape index: {}]   ;;  %s1873_s7 = inlined_call_operand.vmem [shape: f32[2,1,128], index: 7, kind: input, shape index: {}]   ;;  %s1874_s9 = inlined_call_operand.vmem [shape: f32[128,128], index: 9, kind: input, shape index: {}]   ;;  %s1875_s8 = inlined_call_operand.vmem [shape: f32[8,16], index: 8, kind: input, shape index: {}]   ;;  %s1876_s10 = inlined_call_operand.vmem [shape: f32[1,128], index: 10, kind: input, shape index: {}]   ;;  %s1877_s11 = inlined_call_operand.vmem [shape: f32[8,128], index: 11, kind: output, shape index: {}]  }
   0x1   :  { %v40_v0 = vld [vmem:[%s1866_s2] sm:$0xff]  ;;  %v41_v1 = vld [vmem:[%s1866_s2 + $0x8] sm:$0xff]  ;;  %v42_v2 = vld [vmem:[%s1866_s2 + $0x10] sm:$0xff] }
   0x2   :  { %v1299_v3 = vpack.c.bf16 %v41_v1, %v40_v0  ;;  %v43_v4 = vld [vmem:[%s1866_s2 + $0x18] sm:$0xff]  ;;  %v44_v6 = vld [vmem:[%s1866_s2 + $0x20] sm:$0xff]  ;;  %v45_v7 = vld [vmem:[%s1866_s2 + $0x28] sm:$0xff] }
   0x3   :  { %v1303_v5 = vpack.c.bf16 %v43_v4, %v42_v2  ;;  %v1307_v8 = vpack.c.bf16 %v45_v7, %v44_v6  ;;  %v46_v9 = vld [vmem:[%s1866_s2 + $0x30] sm:$0xff]  ;;  %v47_v10 = vld [vmem:[%s1866_s2 + $0x38] sm:$0xff]  ;;  %v38_v11 = vld [vmem:[%s1867_s1] sm:$0xff] }
   0x4   :  { %1300 = vmatprep.subr.bf16.mxu0 %v1299_v3  ;;  %1128 = vmatprep.mubr.f32.mxu0 %v38_v11  ;;  %v140_v12 = vld [vmem:[%s1868_s4] sm:$0xff]  ;;  %v141_v13 = vld [vmem:[%s1868_s4 + $0x8] sm:$0xff]  ;;  %v142_v14 = vld [vmem:[%s1868_s4 + $0x10] sm:$0xff]  ;;  %v1311_v20 = vpack.c.bf16 %v47_v10, %v46_v9 }
   0x5   :  { %1302 = vmatpush3.bf16.msra.mxu0 %v1299_v3  ;;  %v1331_v15 = vpack.c.bf16 %v141_v13, %v140_v12  ;;  %v143_v16 = vld [vmem:[%s1868_s4 + $0x18] sm:$0xff]  ;;  %v144_v18 = vld [vmem:[%s1868_s4 + $0x20] sm:$0xff]  ;;  %v145_v19 = vld [vmem:[%s1868_s4 + $0x28] sm:$0xff] }
   0x6   :  { %1304 = vmatprep.subr.bf16.mxu0 %v1303_v5  ;;  %v1335_v17 = vpack.c.bf16 %v143_v16, %v142_v14  ;;  %v48_v21 = vld [vmem:[%s1866_s2 + $0x40] sm:$0xff]  ;;  %v49_v22 = vld [vmem:[%s1866_s2 + $0x48] sm:$0xff]  ;;  %v1339_v23 = vpack.c.bf16 %v145_v19, %v144_v18  ;;  %v146_v24 = vld [vmem:[%s1868_s4 + $0x30] sm:$0xff] }
   0x7   :  { %1332 = vmatprep.subr.bf16.mxu1 %v1331_v15  ;;  %v147_v25 = vld [vmem:[%s1868_s4 + $0x38] sm:$0xff]  ;;  %v1315_v26 = vpack.c.bf16 %v49_v22, %v48_v21  ;;  %v50_v27 = vld [vmem:[%s1866_s2 + $0x50] sm:$0xff]  ;;  %v148_v30 = vld [vmem:[%s1868_s4 + $0x40] sm:$0xff] }
   0x8   :  { %1334 = vmatpush3.bf16.msra.mxu1 %v1331_v15  ;;  %v51_v28 = vld [vmem:[%s1866_s2 + $0x58] sm:$0xff]  ;;  %v1343_v29 = vpack.c.bf16 %v147_v25, %v146_v24  ;;  %v149_v31 = vld [vmem:[%s1868_s4 + $0x48] sm:$0xff]  ;;  %v52_v33 = vld [vmem:[%s1866_s2 + $0x60] sm:$0xff] }
   0x9   :  { %1306 = vmatpush3.bf16.msra.mxu0 %v1303_v5  ;;  %1336 = vmatprep.subr.bf16.mxu1 %v1335_v17  ;;  %v1319_v32 = vpack.c.bf16 %v51_v28, %v50_v27  ;;  %v53_v34 = vld [vmem:[%s1866_s2 + $0x68] sm:$0xff]  ;;  %v1347_v35 = vpack.c.bf16 %v149_v31, %v148_v30  ;;  %v150_v36 = vld [vmem:[%s1868_s4 + $0x50] sm:$0xff]  ;;  %v151_v37 = vld [vmem:[%s1868_s4 + $0x58] sm:$0xff] }
   0xa   :  { %1308 = vmatprep.subr.bf16.mxu0 %v1307_v8  ;;  %v1323_v38 = vpack.c.bf16 %v53_v34, %v52_v33  ;;  %v54_v39 = vld [vmem:[%s1866_s2 + $0x70] sm:$0xff]  ;;  %v55_v40 = vld [vmem:[%s1866_s2 + $0x78] sm:$0xff]  ;;  %v1351_v41 = vpack.c.bf16 %v151_v37, %v150_v36  ;;  %v152_v42 = vld [vmem:[%s1868_s4 + $0x60] sm:$0xff] }
   0xb   :  { %v153_v43 = vld [vmem:[%s1868_s4 + $0x68] sm:$0xff]  ;;  %v1327_v44 = vpack.c.bf16 %v55_v40, %v54_v39  ;;  %v154_v47 = vld [vmem:[%s1868_s4 + $0x70] sm:$0xff]  ;;  %v155_v48 = vld [vmem:[%s1868_s4 + $0x78] sm:$0xff] }
   0xc   :  { %1338 = vmatpush3.bf16.msra.mxu1 %v1335_v17  ;;  %v1355_v45 = vpack.c.bf16 %v153_v43, %v152_v42  ;;  %v39_v46 = vld [vmem:[%s1867_s1 + $0x8] sm:$0xff]  ;;  %v1359_v49 = vpack.c.bf16 %v155_v48, %v154_v47  ;;  %v940_v50 = vld [vmem:[%s1869_s3] ss:$0 sm:$0xff]  ;;  %v949_v9 = vld [vmem:[%s1868_s4 + $0x98] sm:$0xff] }
   0xd   :  { %1310 = vmatpush3.bf16.msra.mxu0 %v1307_v8  ;;  %1340 = vmatprep.subr.bf16.mxu1 %v1339_v23  ;;  %v1648_v55 = vld [vmem:[%s1870_s0] sm:$0xff]  ;;  %v1655_v59 = vld [vmem:[%s1870_s0 + $0x8] sm:$0xff]  ;;  %v948_v8 = vld [vmem:[%s1868_s4 + $0x90] sm:$0xff] }
   0xe   :  { %1312 = vmatprep.subr.bf16.mxu0 %v1311_v20  ;;  %v946_v60 = vld [vmem:[%s1868_s4 + $0x80] sm:$0xff]  ;;  %v947_v61 = vld [vmem:[%s1868_s4 + $0x88] sm:$0xff]  ;;  %v1371_v10 = vpack.c.bf16 %v949_v9, %v948_v8  ;;  %v952_v14 = vld [vmem:[%s1868_s4 + $0xb0] sm:$0xff] }
   0xf   :  { %v1367_v62 = vpack.c.bf16 %v947_v61, %v946_v60  ;;  %v941_v63 = vld [vmem:[%s1871_s5] ss:$0 sm:$0xff]  ;;  %v951_v12 = vld [vmem:[%s1868_s4 + $0xa8] sm:$0xff]  ;;  %v953_v15 = vld [vmem:[%s1868_s4 + $0xb8] sm:$0xff] }
  0x10   :  { %1342 = vmatpush3.bf16.msra.mxu1 %v1339_v23  ;;  %v950_v11 = vld [vmem:[%s1868_s4 + $0xa0] sm:$0xff]  ;;  %v1379_v16 = vpack.c.bf16 %v953_v15, %v952_v14  ;;  %v955_v18 = vld [vmem:[%s1868_s4 + $0xc8] sm:$0xff]  ;;  %v957_v21 = vld [vmem:[%s1868_s4 + $0xd8] sm:$0xff] }
  0x11   :  { %1314 = vmatpush3.bf16.msra.mxu0 %v1311_v20  ;;  %1344 = vmatprep.subr.bf16.mxu1 %v1343_v29  ;;  %v1375_v13 = vpack.c.bf16 %v951_v12, %v950_v11  ;;  %v954_v17 = vld [vmem:[%s1868_s4 + $0xc0] sm:$0xff]  ;;  %v956_v20 = vld [vmem:[%s1868_s4 + $0xd0] sm:$0xff]  ;;  %v959_v24 = vld [vmem:[%s1868_s4 + $0xe8] sm:$0xff] }
  0x12   :  { %1316 = vmatprep.subr.bf16.mxu0 %v1315_v26  ;;  %v1383_v19 = vpack.c.bf16 %v955_v18, %v954_v17  ;;  %v958_v22 = vld [vmem:[%s1868_s4 + $0xe0] sm:$0xff]  ;;  %v1387_v23 = vpack.c.bf16 %v957_v21, %v956_v20  ;;  %v961_v27 = vld [vmem:[%s1868_s4 + $0xf8] sm:$0xff]  ;;  %v972_v9 = vld [vmem:[%s1868_s4 + $0x110] sm:$0xff] }
  0x13   :  { %v1391_v25 = vpack.c.bf16 %v959_v24, %v958_v22  ;;  %v944_v47 = vld [vmem:[%s1872_s6] ss:$0 sm:$0xff]  ;;  %v976_v15 = vld [vmem:[%s1868_s4 + $0x130] sm:$0xff]  ;;  %v981_v22 = vld [vmem:[%s1868_s4 + $0x158] sm:$0xff] }
  0x14   :  { %1346 = vmatpush3.bf16.msra.mxu1 %v1343_v29  ;;  %v974_v12 = vld [vmem:[%s1868_s4 + $0x120] sm:$0xff]  ;;  %v980_v21 = vld [vmem:[%s1868_s4 + $0x150] sm:$0xff] }
  0x15   :  { %1318 = vmatpush3.bf16.msra.mxu0 %v1315_v26  ;;  %1348 = vmatprep.subr.bf16.mxu1 %v1347_v35  ;;  %v960_v26 = vld [vmem:[%s1868_s4 + $0xf0] sm:$0xff]  ;;  %v978_v18 = vld [vmem:[%s1868_s4 + $0x140] sm:$0xff] }
  0x16   :  { %1320 = vmatprep.subr.bf16.mxu0 %v1319_v32  ;;  %v1395_v28 = vpack.c.bf16 %v961_v27, %v960_v26  ;;  %v982_v24 = vld [vmem:[%s1868_s4 + $0x160] sm:$0xff]  ;;  %v984_v27 = vld [vmem:[%s1868_s4 + $0x170] sm:$0xff] }
  0x18   :  { %1350 = vmatpush3.bf16.msra.mxu1 %v1347_v35 }
  0x19   :  { %1322 = vmatpush3.bf16.msra.mxu0 %v1319_v32  ;;  %1352 = vmatprep.subr.bf16.mxu1 %v1351_v41 }
  0x1a   :  { %1324 = vmatprep.subr.bf16.mxu0 %v1323_v38 }
  0x1c   :  { %1354 = vmatpush3.bf16.msra.mxu1 %v1351_v41 }
  0x1d   :  { %1326 = vmatpush3.bf16.msra.mxu0 %v1323_v38  ;;  %1356 = vmatprep.subr.bf16.mxu1 %v1355_v45 }
  0x1e   :  { %1328 = vmatprep.subr.bf16.mxu0 %v1327_v44 }
  0x20   :  { %1358 = vmatpush3.bf16.msra.mxu1 %v1355_v45 }
  0x21   :  { %1330 = vmatpush3.bf16.msra.mxu0 %v1327_v44  ;;  %1360 = vmatprep.subr.bf16.mxu1 %v1359_v49 }
  0x24   :  { %1129 = vmatmul.mubr.f32.vlgmr.msra.gmra.mrb[0].mxu0 %v39_v46  ;;  %1362 = vmatpush3.bf16.msra.mxu1 %v1359_v49  ;;  %v945_v49 = vld [vmem:[%s1873_s7] ss:$0 sm:$0xff] }
  0xf7   :  { %v1130_v51 = vpop.f32.mrb[0].mxu0 }
  0xf8   :  { %v129_v52 = vpop.f32.mrb[1].mxu0  ;;  %v135_v54 = vadd.f32 %v1130_v51, %v940_v50 }
  0xf9   :  { %v130_v53 = vadd.f32 %v940_v50, %v129_v52 }
  0xfb   :  { %1163 = vmatprep.mubr.f32.mxu1 %v130_v53 }
  0xfc   :  { %1164 = vmatmul.mubr.f32.vlgmr.msra.gmra.mrb[0].mxu1 %v135_v54 }
  0xfd   :  { %1170 = vmatprep.mubr.msk.f32.mxu1 %vm238_vm0, %v1648_v55 }
 0x1cf   :  { %v1165_v56 = vpop.f32.mrb[0].mxu1 }
 0x1d0   :  { %v222_v57 = vpop.f32.mrb[1].mxu1 }
 0x1d1   :  { %v1363_v58 = vpack.c.bf16 %v1165_v56, %v222_v57 }
 0x1d3   :  { %1364 = vmatprep.subr.bf16.mxu1 %v1363_v58 }
 0x1d4   :  { %1366 = vmatpush3.bf16.msra.mxu1 %v1363_v58 }
 0x1d5   :  { %1368 = vmatprep.subr.bf16.mxu1 %v1367_v62 }
 0x1d7   :  { %1171 = vmatmul.mubr.msk.f32.vlgmr.msra.gmra.mrb[2].mxu1 %vm238_vm0, %v1655_v59 }
 0x1d8   :  { %1370 = vmatpush3.bf16.msra.mxu1 %v1367_v62  ;;  %v970_v62 = vld [vmem:[%s1868_s4 + $0x100] sm:$0xff] }
 0x1d9   :  { %1372 = vmatprep.subr.bf16.mxu1 %v1371_v10 }
 0x1dc   :  { %1374 = vmatpush3.bf16.msra.mxu1 %v1371_v10  ;;  %v973_v10 = vld [vmem:[%s1868_s4 + $0x118] sm:$0xff] }
 0x1dd   :  { %1376 = vmatprep.subr.bf16.mxu1 %v1375_v13  ;;  %v1407_v11 = vpack.c.bf16 %v973_v10, %v972_v9  ;;  %v849_v9 = vld [vmem:[%s1874_s9 + $0x38] sm:$0xff] }
 0x1e0   :  { %1378 = vmatpush3.bf16.msra.mxu1 %v1375_v13  ;;  %v975_v13 = vld [vmem:[%s1868_s4 + $0x128] sm:$0xff] }
 0x1e1   :  { %1380 = vmatprep.subr.bf16.mxu1 %v1379_v16  ;;  %v1411_v14 = vpack.c.bf16 %v975_v13, %v974_v12  ;;  %v851_v12 = vld [vmem:[%s1874_s9 + $0x48] sm:$0xff] }
 0x1e4   :  { %1382 = vmatpush3.bf16.msra.mxu1 %v1379_v16  ;;  %v977_v16 = vld [vmem:[%s1868_s4 + $0x138] sm:$0xff] }
 0x1e5   :  { %1384 = vmatprep.subr.bf16.mxu1 %v1383_v19  ;;  %v1415_v17 = vpack.c.bf16 %v977_v16, %v976_v15  ;;  %v853_v15 = vld [vmem:[%s1874_s9 + $0x58] sm:$0xff] }
 0x1e8   :  { %1386 = vmatpush3.bf16.msra.mxu1 %v1383_v19  ;;  %v979_v19 = vld [vmem:[%s1868_s4 + $0x148] sm:$0xff] }
 0x1e9   :  { %1388 = vmatprep.subr.bf16.mxu1 %v1387_v23  ;;  %v1419_v20 = vpack.c.bf16 %v979_v19, %v978_v18  ;;  %v855_v18 = vld [vmem:[%s1874_s9 + $0x68] sm:$0xff] }
 0x1ec   :  { %1390 = vmatpush3.bf16.msra.mxu1 %v1387_v23  ;;  %v1423_v23 = vpack.c.bf16 %v981_v22, %v980_v21  ;;  %v857_v21 = vld [vmem:[%s1874_s9 + $0x78] sm:$0xff] }
 0x1ed   :  { %1392 = vmatprep.subr.bf16.mxu1 %v1391_v25 }
 0x1f0   :  { %1394 = vmatpush3.bf16.msra.mxu1 %v1391_v25  ;;  %v983_v25 = vld [vmem:[%s1868_s4 + $0x168] sm:$0xff] }
 0x1f1   :  { %1396 = vmatprep.subr.bf16.mxu1 %v1395_v28  ;;  %v1427_v26 = vpack.c.bf16 %v983_v25, %v982_v24 }
 0x1f4   :  { %1398 = vmatpush3.bf16.msra.mxu1 %v1395_v28  ;;  %v985_v28 = vld [vmem:[%s1868_s4 + $0x178] sm:$0xff] }
 0x2aa   :  { %v1172_v0 = vpop.f32.mrb[2].mxu1 }
 0x2ab   :  { %v311_v1 = vpop.f32.mrb[3].mxu1  ;;  %v317_v2 = vadd.f32 %v1172_v0, %v941_v63 }
 0x2ac   :  { %v312_v3 = vadd.f32 %v941_v63, %v311_v1  ;;  %v971_v63 = vld [vmem:[%s1868_s4 + $0x108] sm:$0xff]  ;;  %v963_v1 = vld [vmem:[%s1871_s5 + $0x1] ss:$0 sm:$0xff] }
 0x2ad   :  { %v1670_v5 = vmax.f32 %v317_v2, 0.0  ;;  %v1403_v0 = vpack.c.bf16 %v971_v63, %v970_v62  ;;  %v1477_v63 = vmov 0.0|0.0  }
 0x2ae   :  { %v1668_v4 = vmax.f32 %v312_v3, 0.0 }
 0x2af   :  { %v329_v7 = vmul.f32 %v1670_v5, %v1670_v5  ;;  %1404 = vmatprep.subr.bf16.mxu0 %v1403_v0 }
 0x2b0   :  { %322 = vadd.xlane.f32.xlu0 %v1668_v4  ;;  %v328_v6 = vmul.f32 %v1668_v4, %v1668_v4  ;;  %1406 = vmatpush3.bf16.msra.mxu0 %v1403_v0  ;;  %v1479_v0 = vmov 0.0  }
 0x2b1   :  { %1408 = vmatprep.subr.bf16.mxu0 %v1407_v11 }
 0x2b2   :  { %330 = vadd.xlane.f32.xlu1 %v328_v6 }
 0x2b4   :  { %324 = vadd.xlane.f32.xlu0 %v1670_v5  ;;  %1410 = vmatpush3.bf16.msra.mxu0 %v1407_v11  ;;  %v850_v11 = vld [vmem:[%s1874_s9 + $0x40] sm:$0xff] }
 0x2b5   :  { %1412 = vmatprep.subr.bf16.mxu0 %v1411_v14  ;;  %v1455_v13 = vpack.c.bf16 %v851_v12, %v850_v11 }
 0x2b6   :  { %332 = vadd.xlane.f32.xlu1 %v329_v7 }
 0x2b8   :  { %1414 = vmatpush3.bf16.msra.mxu0 %v1411_v14  ;;  %v852_v14 = vld [vmem:[%s1874_s9 + $0x50] sm:$0xff] }
 0x2b9   :  { %1416 = vmatprep.subr.bf16.mxu0 %v1415_v17  ;;  %v1458_v16 = vpack.c.bf16 %v853_v15, %v852_v14 }
 0x2bc   :  { %1418 = vmatpush3.bf16.msra.mxu0 %v1415_v17  ;;  %v854_v17 = vld [vmem:[%s1874_s9 + $0x60] sm:$0xff] }
 0x2bd   :  { %1420 = vmatprep.subr.bf16.mxu0 %v1419_v20  ;;  %v1461_v19 = vpack.c.bf16 %v855_v18, %v854_v17 }
 0x2c0   :  { %1422 = vmatpush3.bf16.msra.mxu0 %v1419_v20  ;;  %v856_v20 = vld [vmem:[%s1874_s9 + $0x70] sm:$0xff] }
 0x2c1   :  { %1424 = vmatprep.subr.bf16.mxu0 %v1423_v23  ;;  %v1464_v22 = vpack.c.bf16 %v857_v21, %v856_v20 }
 0x2c4   :  { %1426 = vmatpush3.bf16.msra.mxu0 %v1423_v23  ;;  %v987_v23 = vld [vmem:[%s1871_s5 + $0x2] ss:$0 sm:$0xff] }
 0x2c5   :  { %1428 = vmatprep.subr.bf16.mxu0 %v1427_v26 }
 0x2c8   :  { %1430 = vmatpush3.bf16.msra.mxu0 %v1427_v26 }
 0x33d   :  { %v323_v29 = vpop.xlane.xlu0 %322 }
 0x33e   :  { %v326_v30 = vmul.f32 0.03125, %v323_v29  ;;  %v1431_v29 = vpack.c.bf16 %v985_v28, %v984_v27 }
 0x33f   :  { %v331_v31 = vpop.xlane.xlu1 %330 }
 0x340   :  { %v336_v32 = vmul.f32 %v326_v30, %v326_v30  ;;  %v334_v33 = vmul.f32 0.03125, %v331_v31  ;;  %v342_v45 = vsub.f32 %v1668_v4, %v326_v30  ;;  %1432 = vmatprep.subr.bf16.mxu0 %v1431_v29 }
 0x341   :  { %v325_v34 = vpop.xlane.xlu0 %324  ;;  %1434 = vmatpush3.bf16.msra.mxu0 %v1431_v29  ;;  %v768_v29 = vld [vmem:[%s1875_s8] sm:$0xff] }
 0x342   :  { %v338_v35 = vsub.f32 %v334_v33, %v336_v32  ;;  %v327_v36 = vmul.f32 0.03125, %v325_v34  ;;  %1442 = vmatprep.subr.bf16.mxu0 %v1477_v63 }
 0x343   :  { %v333_v37 = vpop.xlane.xlu1 %332 }
 0x344   :  { %v340_v38 = vmax.f32 %v338_v35, 0.0  ;;  %v337_v39 = vmul.f32 %v327_v36, %v327_v36  ;;  %v335_v40 = vmul.f32 0.03125, %v333_v37  ;;  %v343_v50 = vsub.f32 %v1670_v5, %v327_v36 }
 0x346   :  { %v344_v41 = vadd.f32 1e-05, %v340_v38  ;;  %v339_v42 = vsub.f32 %v335_v40, %v337_v39 }
 0x348   :  { %1469 = vrsqrt.f32 %v344_v41  ;;  %v341_v43 = vmax.f32 %v339_v42, 0.0 }
 0x34a   :  { %v345_v44 = vadd.f32 1e-05, %v341_v43 }
 0x34c   :  { %1471 = vrsqrt.f32 %v345_v44 }
 0x352   :  { %v1470_v46 = vpop.eup %1469 }
 0x353   :  { %v348_v48 = vmul.f32 %v1470_v46, %v342_v45 }
 0x355   :  { %v357_v51 = vmul.f32 %v944_v47, %v348_v48 }
 0x356   :  { %v1472_v52 = vpop.eup %1471 }
 0x357   :  { %v349_v53 = vmul.f32 %v1472_v52, %v343_v50  ;;  %v366_v54 = vadd.f32 %v945_v49, %v357_v51 }
 0x359   :  { %v358_v56 = vmul.f32 %v944_v47, %v349_v53  ;;  %1205 = vmatprep.mubr.f32.mxu1 %v366_v54  ;;  %v969_v54 = vld [vmem:[%s1873_s7 + $0x1] ss:$0 sm:$0xff] }
 0x35b   :  { %v367_v57 = vadd.f32 %v945_v49, %v358_v56  ;;  %v967_v49 = vld [vmem:[%s1872_s6 + $0x1] ss:$0 sm:$0xff] }
 0x35d   :  { %1206 = vmatmul.mubr.f32.vlgmr.msra.gmra.mrb[4].mxu1 %v367_v57 }
 0x35e   :  { %1212 = vmatprep.mubr.msk.f32.mxu1 %vm238_vm0, %v1648_v55 }
 0x430   :  { %v1207_v58 = vpop.f32.mrb[4].mxu1 }
 0x431   :  { %v451_v60 = vpop.f32.mrb[5].mxu1 }
 0x432   :  { %v1399_v61 = vpack.c.bf16 %v1207_v58, %v451_v60 }
 0x434   :  { %1400 = vmatprep.subr.bf16.mxu1 %v1399_v61 }
 0x435   :  { %1402 = vmatpush3.bf16.msra.mxu1 %v1399_v61 }
 0x438   :  { %1213 = vmatmul.mubr.msk.f32.vlgmr.msra.gmra.mrb[6].mxu1 %vm238_vm0, %v1655_v59 }
 0x439   :  { %1254 = vmatprep.mubr.msk.f32.mxu1 %vm238_vm0, %v1648_v55 }
 0x50b   :  { %v1214_v2 = vpop.f32.mrb[6].mxu1 }
 0x50c   :  { %v540_v3 = vadd.f32 %v1214_v2, %v963_v1  ;;  %v534_v4 = vpop.f32.mrb[7].mxu1  ;;  %v843_v2 = vld [vmem:[%s1874_s9 + $0x8] sm:$0xff] }
 0x50d   :  { %v535_v5 = vadd.f32 %v963_v1, %v534_v4  ;;  %v842_v1 = vld [vmem:[%s1874_s9] sm:$0xff]  ;;  %v845_v4 = vld [vmem:[%s1874_s9 + $0x18] sm:$0xff] }
 0x50e   :  { %v1743_v55 = vmax.f32 %v540_v3, 0.0  ;;  %v844_v3 = vld [vmem:[%s1874_s9 + $0x10] sm:$0xff] }
 0x50f   :  { %v1745_v6 = vmax.f32 %v535_v5, 0.0  ;;  %v1446_v5 = vpack.c.bf16 %v845_v4, %v844_v3 }
 0x510   :  { %547 = vadd.xlane.f32.xlu1 %v1743_v55  ;;  %v552_v7 = vmul.f32 %v1743_v55, %v1743_v55 }
 0x511   :  { %545 = vadd.xlane.f32.xlu0 %v1745_v6  ;;  %v551_v8 = vmul.f32 %v1745_v6, %v1745_v6 }
 0x514   :  { %555 = vadd.xlane.f32.xlu1 %v552_v7 }
 0x515   :  { %553 = vadd.xlane.f32.xlu0 %v551_v8  ;;  %v848_v8 = vld [vmem:[%s1874_s9 + $0x30] sm:$0xff] }
 0x516   :  { %v1452_v10 = vpack.c.bf16 %v849_v9, %v848_v8 }
 0x59d   :  { %v548_v30 = vpop.xlane.xlu1 %547 }
 0x59e   :  { %v550_v31 = vmul.f32 0.03125, %v548_v30  ;;  %v546_v32 = vpop.xlane.xlu0 %545 }
 0x59f   :  { %v549_v33 = vmul.f32 0.03125, %v546_v32  ;;  %v991_v32 = vld [vmem:[%s1876_s10] ss:$0 sm:$0xff] }
 0x5a0   :  { %v560_v35 = vmul.f32 %v550_v31, %v550_v31  ;;  %v566_v46 = vsub.f32 %v1743_v55, %v550_v31  ;;  %v846_v55 = vld [vmem:[%s1874_s9 + $0x20] sm:$0xff] }
 0x5a1   :  { %v556_v34 = vpop.xlane.xlu1 %555  ;;  %v559_v38 = vmul.f32 %v549_v33, %v549_v33  ;;  %v565_v48 = vsub.f32 %v1745_v6, %v549_v33  ;;  %v847_v6 = vld [vmem:[%s1874_s9 + $0x28] sm:$0xff] }
 0x5a2   :  { %v558_v36 = vmul.f32 0.03125, %v556_v34  ;;  %v554_v37 = vpop.xlane.xlu0 %553  ;;  %v1449_v7 = vpack.c.bf16 %v847_v6, %v846_v55 }
 0x5a3   :  { %v557_v39 = vmul.f32 0.03125, %v554_v37 }
 0x5a4   :  { %v562_v40 = vsub.f32 %v558_v36, %v560_v35 }
 0x5a5   :  { %v561_v41 = vsub.f32 %v557_v39, %v559_v38 }
 0x5a6   :  { %v564_v42 = vmax.f32 %v562_v40, 0.0 }
 0x5a7   :  { %v563_v43 = vmax.f32 %v561_v41, 0.0 }
 0x5a8   :  { %v568_v44 = vadd.f32 1e-05, %v564_v42 }
 0x5a9   :  { %v567_v45 = vadd.f32 1e-05, %v563_v43 }
 0x5aa   :  { %1473 = vrsqrt.f32 %v568_v44 }
 0x5ab   :  { %1475 = vrsqrt.f32 %v567_v45 }
 0x5b4   :  { %v1474_v47 = vpop.eup %1473 }
 0x5b5   :  { %v1476_v50 = vpop.eup %1475  ;;  %v572_v51 = vmul.f32 %v1474_v47, %v566_v46 }
 0x5b6   :  { %v571_v52 = vmul.f32 %v1476_v50, %v565_v48 }
 0x5b7   :  { %v582_v53 = vmul.f32 %v967_v49, %v572_v51 }
 0x5b8   :  { %v581_v56 = vmul.f32 %v967_v49, %v571_v52 }
 0x5b9   :  { %v592_v58 = vadd.f32 %v969_v54, %v582_v53 }
 0x5ba   :  { %v591_v57 = vadd.f32 %v969_v54, %v581_v56 }
 0x5bc   :  { %1247 = vmatprep.mubr.f32.mxu0 %v591_v57 }
 0x5bd   :  { %1248 = vmatmul.mubr.f32.vlgmr.msra.gmra.mrb[2].mxu0 %v592_v58 }
 0x5be   :  { %1296 = vmatprep.mubr.msk.f32.mxu0 %vm1478_vm1, %v1479_v0 }
 0x690   :  { %v1249_v60 = vpop.f32.mrb[2].mxu0 }
 0x691   :  { %v676_v61 = vpop.f32.mrb[3].mxu0 }
 0x692   :  { %v1435_v62 = vpack.c.bf16 %v1249_v60, %v676_v61 }
 0x694   :  { %1436 = vmatprep.subr.bf16.mxu1 %v1435_v62 }
 0x695   :  { %1438 = vmatpush3.bf16.msra.mxu1 %v1435_v62 }
 0x696   :  { %1439 = vmatprep.subr.bf16.mxu1 %v1477_v63 }
 0x698   :  { %1255 = vmatmul.mubr.msk.f32.vlgmr.msra.gmra.mrb[8].mxu1 %vm238_vm0, %v1655_v59  ;;  %v1443_v59 = vpack.c.bf16 %v843_v2, %v842_v1 }
 0x699   :  { %1261 = vmatprep.mubr.msk.f32.mxu1 %vm1478_vm1, %v1479_v0 }
 0x69a   :  { %1444 = vmatpush3.bf16.msra.mxu0 %v1443_v59 }
 0x69b   :  { %1445 = vmatprep.subr.bf16.mxu0 %v1477_v63 }
 0x69e   :  { %1447 = vmatpush3.bf16.msra.mxu0 %v1446_v5 }
 0x69f   :  { %1448 = vmatprep.subr.bf16.mxu0 %v1477_v63 }
 0x6a2   :  { %1450 = vmatpush3.bf16.msra.mxu0 %v1449_v7 }
 0x6a3   :  { %1451 = vmatprep.subr.bf16.mxu0 %v1477_v63 }
 0x6a6   :  { %1453 = vmatpush3.bf16.msra.mxu0 %v1452_v10 }
 0x6a7   :  { %1454 = vmatprep.subr.bf16.mxu0 %v1477_v63 }
 0x6aa   :  { %1456 = vmatpush3.bf16.msra.mxu0 %v1455_v13 }
 0x6ab   :  { %1457 = vmatprep.subr.bf16.mxu0 %v1477_v63 }
 0x6ae   :  { %1459 = vmatpush3.bf16.msra.mxu0 %v1458_v16 }
 0x6af   :  { %1460 = vmatprep.subr.bf16.mxu0 %v1477_v63 }
 0x6b2   :  { %1462 = vmatpush3.bf16.msra.mxu0 %v1461_v19 }
 0x6b3   :  { %1463 = vmatprep.subr.bf16.mxu0 %v1477_v63 }
 0x6b6   :  { %1465 = vmatpush3.bf16.msra.mxu0 %v1464_v22 }
 0x76b   :  { %v1256_v24 = vpop.f32.mrb[8].mxu1 }
 0x76c   :  { %v765_v25 = vadd.f32 %v1256_v24, %v987_v23  ;;  %v759_v26 = vpop.f32.mrb[9].mxu1 }
 0x76d   :  { %v760_v27 = vadd.f32 %v987_v23, %v759_v26 }
 0x76f   :  { %v1440_v28 = vpack.c.bf16 %v765_v25, %v760_v27 }
 0x771   :  { %1441 = vmatpush3.bf16.msra.mxu1 %v1440_v28 }
 0x774   :  { %1262 = vmatmul.mubr.msk.f32.vlgmr.msra.gmra.mrb[10].mxu1 %vm238_vm0, %v768_v29 }
 0x847   :  { %v838_v30 = vpop.f32.mrb[10].mxu1 }
 0x848   :  { %v1263_v31 = vpop.f32.mrb[11].mxu1  ;;  %1297 = vmatmul.mubr.f32.vlgmr.msra.gmra.mrb[4].mxu0 %v838_v30 }
 0x91b   :  { %v931_v33 = vpop.f32.mrb[4].mxu0 }
 0x91c   :  { %v932_v34 = vadd.f32 %v991_v32, %v931_v33  ;;  %v1298_v35 = vpop.f32.mrb[5].mxu0 }
 0x91e   :  { %935 = vst [vmem:[%s1877_s11] sm:$0xff] %v932_v34 }

</bundles_post_ra>
